<compile_context>
chip_gen: v5e
topology: v5e:2x2
jax: 0.10.0
libtpu: 0.0.40
codegen_flags: <defaults>
</compile_context>

<pallas_src>
import functools

import jax
import jax.numpy as jnp
import numpy as np
from jax.experimental import pallas as pl
from jax.experimental.pallas import tpu as pltpu

_MiB = 1024 * 1024


# ----------------------------------------------------------------------------
# Kernel
# ----------------------------------------------------------------------------
def _reversible_block_kernel(
    x_ref,                                   # (TM, 2*Hp) activations
    wf1_ref, bf1_ref, wf2_ref, bf2_ref,      # f params (weights bf16, biases f32)
    wg1_ref, bg1_ref, wg2_ref, bg2_ref,      # g params
    y_ref,                                   # (TM, 2*Hp) output
):
    H = wf1_ref.shape[0]                     # padded hidden dim (static)
    cd = wf1_ref.dtype                       # bf16 compute dtype for the MXU

    x1 = x_ref[:, :H].astype(jnp.float32)
    x2 = x_ref[:, H:].astype(jnp.float32)

    # ---- f(x2): Linear -> ReLU -> Linear (bf16 matmuls, f32 accumulate) ----
    h = jnp.dot(x2.astype(cd), wf1_ref[...], preferred_element_type=jnp.float32)
    h = jnp.maximum(h + bf1_ref[...], 0.0)
    f_out = jnp.dot(h.astype(cd), wf2_ref[...], preferred_element_type=jnp.float32)
    f_out = f_out + bf2_ref[...]
    y1 = x1 + f_out                          # residual in f32

    # ---- g(y1): Linear -> ReLU -> Linear ----
    h2 = jnp.dot(y1.astype(cd), wg1_ref[...], preferred_element_type=jnp.float32)
    h2 = jnp.maximum(h2 + bg1_ref[...], 0.0)
    g_out = jnp.dot(h2.astype(cd), wg2_ref[...], preferred_element_type=jnp.float32)
    g_out = g_out + bg2_ref[...]
    y2 = x2 + g_out

    # Two lane-dense slice stores (fused "cat"); no concat temporary.
    y_ref[:, :H] = y1.astype(y_ref.dtype)
    y_ref[:, H:] = y2.astype(y_ref.dtype)


# ----------------------------------------------------------------------------
# Generation-aware VMEM sizing
# ----------------------------------------------------------------------------
def _round_up(a, b):
    return ((a + b - 1) // b) * b


def _vmem_budget_and_limit():
    """Per-TensorCore VMEM budget (for tile sizing) and vmem_limit_bytes."""
    try:
        cap = int(pltpu.get_tpu_info().vmem_capacity_bytes)
    except Exception:
        cap = 64 * _MiB                      # conservative: v7x per-TC capacity
    # 128 MiB parts (v5e/v6e) -> budget 104 MiB, limit 112 MiB.
    # 64 MiB parts (v7x per TC) -> budget 48 MiB, limit 56 MiB.
    budget = max(cap - 24 * _MiB, (cap * 3) // 4)
    limit = min(cap - 8 * _MiB, budget + 8 * _MiB)
    return budget, limit


def _choose_row_tile(M, Hp, Hfp, io_bytes, weight_bytes, vmem_budget):
    # Per-row footprint:
    #   - double-buffered x and y tiles: (2 + 2) * (2*Hp) * io_bytes
    #   - f32 intermediates (x1/x2/y1/y2/f/g at Hp lanes, h/h2 at Hfp lanes)
    #     plus bf16 MXU-input casts: ~28*Hp + 12*Hfp bytes.
    per_row = 4 * (2 * Hp) * io_bytes + 28 * Hp + 12 * Hfp
    avail = vmem_budget - weight_bytes
    if avail < per_row * 8:
        # TODO(synk): add an Hf-tiled (reduction grid axis + VMEM accumulator)
        # fallback for weight sets that do not fit VMEM (large H/Hf, esp. v7x).
        raise ValueError(
            "f/g weights do not fit the VMEM budget for a weight-resident "
            "kernel; reduce H/Hf or add the Hf-tiled fallback."
        )
    tm = int(avail // per_row)
    if tm >= 256:
        tm = min((tm // 256) * 256, 4096)    # MXU-friendly, fewer grid steps
    else:
        tm = max(8, (tm // 8) * 8)
    tm = min(tm, _round_up(M, 8))            # never exceed the (padded) row count
    return max(8, (tm // 8) * 8)


# ----------------------------------------------------------------------------
# Wrapper
# ----------------------------------------------------------------------------
@functools.partial(
    jax.jit, static_argnames=("split_along_dim", "row_tile", "activation_dtype")
)
def reversible_block_forward(x, params, split_along_dim=-1, row_tile=None,
                             activation_dtype=None):
    """Forward pass of ReversibleBlock with 2-layer-MLP f/g blocks.

    x: (B, S, 2*H); split along the last (feature) axis.
    activation_dtype: if set (e.g. jnp.bfloat16), the activation stream through
      HBM uses that dtype (halves bandwidth in the HBM-bound regime); the
      result is returned in that dtype. Default keeps x.dtype (module semantics).
    """
    assert split_along_dim in (-1, x.ndim - 1), "kernel layout assumes feature-axis split"
    B, S, two_h = x.shape
    H = two_h // 2
    assert two_h == 2 * H, "feature axis must be even (chunk into two halves)"
    M = B * S

    wf1, bf1, wf2, bf2, wg1, bg1, wg2, bg2 = params
    Hf = wf1.shape[1]

    io_dtype = jnp.dtype(x.dtype) if activation_dtype is None else jnp.dtype(activation_dtype)
    io_bytes = io_dtype.itemsize

    # Pad feature dims to multiples of 128: lane-dense (unmasked) stores and
    # full MXU passes. Zero padding keeps the valid columns numerically exact.
    Hp = _round_up(H, 128)
    Hfp = _round_up(Hf, 128)
    two_hp = 2 * Hp

    cd = jnp.bfloat16

    def pad_w(w, r, c):
        return jnp.pad(w.astype(cd), ((0, r - w.shape[0]), (0, c - w.shape[1])))

    def pad_b(b, c):
        return jnp.pad(b.astype(jnp.float32), ((0, 0), (0, c - b.shape[1])))

    wf1p, wf2p = pad_w(wf1, Hp, Hfp), pad_w(wf2, Hfp, Hp)
    wg1p, wg2p = pad_w(wg1, Hp, Hfp), pad_w(wg2, Hfp, Hp)
    bf1p, bf2p = pad_b(bf1, Hfp), pad_b(bf2, Hp)
    bg1p, bg2p = pad_b(bg1, Hfp), pad_b(bg2, Hp)

    # Single VMEM-resident copy of the weights (unblocked specs below).
    weight_bytes = 4 * Hp * Hfp * 2 + 2 * (Hp + Hfp) * 4

    vmem_budget, vmem_limit = _vmem_budget_and_limit()
    if row_tile is not None:
        tm = max(8, (int(row_tile) // 8) * 8)
    else:
        tm = _choose_row_tile(M, Hp, Hfp, io_bytes, weight_bytes, vmem_budget)

    # Flatten (B, S) -> M rows and (only if H is unaligned) repack the two
    # halves into a 2*Hp-wide slab. For 128-aligned H this is copy-free.
    x2d = x.reshape(M, two_h).astype(io_dtype)
    if Hp != H:
        x2d = jnp.concatenate(
            [jnp.pad(x2d[:, :H], ((0, 0), (0, Hp - H))),
             jnp.pad(x2d[:, H:], ((0, 0), (0, Hp - H)))],
            axis=-1,
        )

    m_pad = pl.cdiv(M, tm) * tm
    if m_pad != M:
        x2d = jnp.pad(x2d, ((0, m_pad - M), (0, 0)))
    grid = (m_pad // tm,)

    row_spec = pl.BlockSpec((tm, two_hp), lambda i: (i, 0))
    # Unblocked, whole-array-in-VMEM specs: one resident copy of each weight /
    # bias for the whole grid (no double-buffered second copy).
    wspec = pl.BlockSpec(memory_space=pltpu.MemorySpace.VMEM)

    flops = 4 * 2 * m_pad * Hp * Hfp
    bytes_accessed = int(2 * m_pad * two_hp * io_bytes + weight_bytes)

    y2d = pl.pallas_call(
        _reversible_block_kernel,
        out_shape=jax.ShapeDtypeStruct((m_pad, two_hp), io_dtype),
        grid=grid,
        in_specs=[
            row_spec,                         # x row tiles (double-buffered)
            wspec, wspec, wspec, wspec,       # f params (resident)
            wspec, wspec, wspec, wspec,       # g params (resident)
        ],
        out_specs=row_spec,
        compiler_params=pltpu.CompilerParams(
            dimension_semantics=("parallel",),   # shard rows across TCs on v7x
            vmem_limit_bytes=int(vmem_limit),
        ),
        cost_estimate=pl.CostEstimate(
            flops=flops, transcendentals=0, bytes_accessed=bytes_accessed
        ),
    )(x2d, wf1p, bf1p, wf2p, bf2p, wg1p, bg1p, wg2p, bg2p)

    if m_pad != M:
        y2d = y2d[:M]
    if Hp != H:
        y2d = jnp.concatenate([y2d[:, :H], y2d[:, Hp:Hp + H]], axis=-1)
    return y2d.reshape(B, S, two_h)


# ----------------------------------------------------------------------------
# Pure-JAX references (for sanity checks)
# ----------------------------------------------------------------------------
def _reference_forward(x, params, compute_dtype=jnp.bfloat16):
    wf1, bf1, wf2, bf2, wg1, bg1, wg2, bg2 = params

    def mm(a, w):
        return jnp.dot(a.astype(compute_dtype), w.astype(compute_dtype),
                       preferred_element_type=jnp.float32)

    x1, x2 = jnp.split(x, 2, axis=-1)
    f = mm(jnp.maximum(mm(x2, wf1) + bf1[0], 0.0), wf2) + bf2[0]
    y1 = x1 + f
    g = mm(jnp.maximum(mm(y1, wg1) + bg1[0], 0.0), wg2) + bg2[0]
    y2 = x2 + g
    return jnp.concatenate([y1, y2], axis=-1)


def _init_params(key, H, Hf):
    ks = jax.random.split(key, 8)
    scale_in = 1.0 / np.sqrt(H)
    scale_hid = 1.0 / np.sqrt(Hf)
    wf1 = jax.random.normal(ks[0], (H, Hf), jnp.float32) * scale_in
    bf1 = jax.random.normal(ks[1], (1, Hf), jnp.float32) * 0.01
    wf2 = jax.random.normal(ks[2], (Hf, H), jnp.float32) * scale_hid
    bf2 = jax.random.normal(ks[3], (1, H), jnp.float32) * 0.01
    wg1 = jax.random.normal(ks[4], (H, Hf), jnp.float32) * scale_in
    bg1 = jax.random.normal(ks[5], (1, Hf), jnp.float32) * 0.01
    wg2 = jax.random.normal(ks[6], (Hf, H), jnp.float32) * scale_hid
    bg2 = jax.random.normal(ks[7], (1, H), jnp.float32) * 0.01
    return (wf1, bf1, wf2, bf2, wg1, bg1, wg2, bg2)


if __name__ == "__main__":
    key = jax.random.PRNGKey(0)
    k_x, k_p = jax.random.split(key)

    B, S, H, Hf = 2, 8, 32, 64          # input x: (B, S, 2*H) = (2, 8, 64)
    x = jax.random.normal(k_x, (B, S, 2 * H), jnp.float32)
    params = _init_params(k_p, H, Hf)

    # row_tile=8 exercises the multi-step (grid=(2,)) pipelined path at demo size.
    y = reversible_block_forward(x, params, row_tile=8)
    y = jax.block_until_ready(y)
    assert y.shape == x.shape and y.dtype == x.dtype

    # Match against a reference using the same bf16-matmul / f32-accumulate recipe.
    y_ref_bf16 = _reference_forward(x, params, compute_dtype=jnp.bfloat16)
    np.testing.assert_allclose(np.asarray(y), np.asarray(y_ref_bf16),
                               rtol=5e-3, atol=5e-3)
    # Looser sanity check against the full-f32 reference.
    y_ref_f32 = _reference_forward(x, params, compute_dtype=jnp.float32)
    np.testing.assert_allclose(np.asarray(y), np.asarray(y_ref_f32),
                               rtol=5e-2, atol=5e-2)

    # Smoke-test the auto-tiled, bf16-activation-I/O path (halved HBM traffic).
    y_bf16 = reversible_block_forward(x, params, activation_dtype=jnp.bfloat16)
    y_bf16 = jax.block_until_ready(y_bf16)
    np.testing.assert_allclose(np.asarray(y_bf16.astype(jnp.float32)),
                               np.asarray(y_ref_f32), rtol=3e-2, atol=3e-2)

    # TODO(synk): backward_pass (activation-reconstructing backprop) and the
    # fix_random_seed RNG bookkeeping are autograd-time routines, not part of
    # the forward graph; not implemented here.
    print("KERNEL_OK")
</pallas_src>

<mosaic_0001>
module attributes {stable_mosaic.version = 11 : i64} {
  func.func @_reversible_block_kernel(%arg0: i32, %arg1: memref<8x256xf32, #tpu.memory_space<vmem>>, %arg2: memref<128x128xbf16, #tpu.memory_space<vmem>>, %arg3: memref<1x128xf32, #tpu.memory_space<vmem>>, %arg4: memref<128x128xbf16, #tpu.memory_space<vmem>>, %arg5: memref<1x128xf32, #tpu.memory_space<vmem>>, %arg6: memref<128x128xbf16, #tpu.memory_space<vmem>>, %arg7: memref<1x128xf32, #tpu.memory_space<vmem>>, %arg8: memref<128x128xbf16, #tpu.memory_space<vmem>>, %arg9: memref<1x128xf32, #tpu.memory_space<vmem>>, %arg10: memref<8x256xf32, #tpu.memory_space<vmem>>) attributes {dimension_semantics = [#tpu.dimension_semantics<parallel>], iteration_bounds = array<i64: 2>, scalar_prefetch = 0 : i64, scratch_operands = 0 : i64, tpu.core_type = #tpu.core_type<tc>, window_params = [{transform_indices = @transform_0, window_bounds = array<i64: 8, 256>}, {pipeline_mode = #tpu.pipeline_mode<synchronous>, transform_indices = @transform_1, window_bounds = array<i64: 128, 128>}, {pipeline_mode = #tpu.pipeline_mode<synchronous>, transform_indices = @transform_2, window_bounds = array<i64: 1, 128>}, {pipeline_mode = #tpu.pipeline_mode<synchronous>, transform_indices = @transform_3, window_bounds = array<i64: 128, 128>}, {pipeline_mode = #tpu.pipeline_mode<synchronous>, transform_indices = @transform_4, window_bounds = array<i64: 1, 128>}, {pipeline_mode = #tpu.pipeline_mode<synchronous>, transform_indices = @transform_5, window_bounds = array<i64: 128, 128>}, {pipeline_mode = #tpu.pipeline_mode<synchronous>, transform_indices = @transform_6, window_bounds = array<i64: 1, 128>}, {pipeline_mode = #tpu.pipeline_mode<synchronous>, transform_indices = @transform_7, window_bounds = array<i64: 128, 128>}, {pipeline_mode = #tpu.pipeline_mode<synchronous>, transform_indices = @transform_8, window_bounds = array<i64: 1, 128>}, {transform_indices = @transform_9, window_bounds = array<i64: 8, 256>}]} {
    %c0 = arith.constant 0 : index
    %c0_0 = arith.constant 0 : index
    %0 = vector.load %arg1[%c0, %c0_0] : memref<8x256xf32, #tpu.memory_space<vmem>>, vector<8x128xf32>
    %c0_1 = arith.constant 0 : index
    %c128 = arith.constant 128 : index
    %1 = vector.load %arg1[%c0_1, %c128] : memref<8x256xf32, #tpu.memory_space<vmem>>, vector<8x128xf32>
    %2 = arith.truncf %1 : vector<8x128xf32> to vector<8x128xbf16>
    %c0_2 = arith.constant 0 : index
    %c0_3 = arith.constant 0 : index
    %3 = vector.load %arg2[%c0_2, %c0_3] : memref<128x128xbf16, #tpu.memory_space<vmem>>, vector<128x128xbf16>
    %cst = arith.constant dense<0.000000e+00> : vector<8x128xf32>
    %4 = tpu.matmul %2, %3, %cst {dimension_numbers = #tpu.dot_dimension_numbers<[1], [0], [0], [1], [0, 0, 1, 1], [], []>} : vector<8x128xbf16>, vector<128x128xbf16>, vector<8x128xf32> -> vector<8x128xf32>
    %c0_4 = arith.constant 0 : index
    %c0_5 = arith.constant 0 : index
    %5 = vector.load %arg3[%c0_4, %c0_5] : memref<1x128xf32, #tpu.memory_space<vmem>>, vector<1x128xf32>
    %6 = vector.broadcast %5 : vector<1x128xf32> to vector<8x128xf32>
    %7 = arith.addf %4, %6 : vector<8x128xf32>
    %cst_6 = arith.constant 0.000000e+00 : f32
    %8 = vector.broadcast %cst_6 : f32 to vector<8x128xf32>
    %9 = arith.maximumf %7, %8 : vector<8x128xf32>
    %10 = arith.truncf %9 : vector<8x128xf32> to vector<8x128xbf16>
    %c0_7 = arith.constant 0 : index
    %c0_8 = arith.constant 0 : index
    %11 = vector.load %arg4[%c0_7, %c0_8] : memref<128x128xbf16, #tpu.memory_space<vmem>>, vector<128x128xbf16>
    %cst_9 = arith.constant dense<0.000000e+00> : vector<8x128xf32>
    %12 = tpu.matmul %10, %11, %cst_9 {dimension_numbers = #tpu.dot_dimension_numbers<[1], [0], [0], [1], [0, 0, 1, 1], [], []>} : vector<8x128xbf16>, vector<128x128xbf16>, vector<8x128xf32> -> vector<8x128xf32>
    %c0_10 = arith.constant 0 : index
    %c0_11 = arith.constant 0 : index
    %13 = vector.load %arg5[%c0_10, %c0_11] : memref<1x128xf32, #tpu.memory_space<vmem>>, vector<1x128xf32>
    %14 = vector.broadcast %13 : vector<1x128xf32> to vector<8x128xf32>
    %15 = arith.addf %12, %14 : vector<8x128xf32>
    %16 = arith.addf %0, %15 : vector<8x128xf32>
    %17 = arith.truncf %16 : vector<8x128xf32> to vector<8x128xbf16>
    %c0_12 = arith.constant 0 : index
    %c0_13 = arith.constant 0 : index
    %18 = vector.load %arg6[%c0_12, %c0_13] : memref<128x128xbf16, #tpu.memory_space<vmem>>, vector<128x128xbf16>
    %cst_14 = arith.constant dense<0.000000e+00> : vector<8x128xf32>
    %19 = tpu.matmul %17, %18, %cst_14 {dimension_numbers = #tpu.dot_dimension_numbers<[1], [0], [0], [1], [0, 0, 1, 1], [], []>} : vector<8x128xbf16>, vector<128x128xbf16>, vector<8x128xf32> -> vector<8x128xf32>
    %c0_15 = arith.constant 0 : index
    %c0_16 = arith.constant 0 : index
    %20 = vector.load %arg7[%c0_15, %c0_16] : memref<1x128xf32, #tpu.memory_space<vmem>>, vector<1x128xf32>
    %21 = vector.broadcast %20 : vector<1x128xf32> to vector<8x128xf32>
    %22 = arith.addf %19, %21 : vector<8x128xf32>
    %cst_17 = arith.constant 0.000000e+00 : f32
    %23 = vector.broadcast %cst_17 : f32 to vector<8x128xf32>
    %24 = arith.maximumf %22, %23 : vector<8x128xf32>
    %25 = arith.truncf %24 : vector<8x128xf32> to vector<8x128xbf16>
    %c0_18 = arith.constant 0 : index
    %c0_19 = arith.constant 0 : index
    %26 = vector.load %arg8[%c0_18, %c0_19] : memref<128x128xbf16, #tpu.memory_space<vmem>>, vector<128x128xbf16>
    %cst_20 = arith.constant dense<0.000000e+00> : vector<8x128xf32>
    %27 = tpu.matmul %25, %26, %cst_20 {dimension_numbers = #tpu.dot_dimension_numbers<[1], [0], [0], [1], [0, 0, 1, 1], [], []>} : vector<8x128xbf16>, vector<128x128xbf16>, vector<8x128xf32> -> vector<8x128xf32>
    %c0_21 = arith.constant 0 : index
    %c0_22 = arith.constant 0 : index
    %28 = vector.load %arg9[%c0_21, %c0_22] : memref<1x128xf32, #tpu.memory_space<vmem>>, vector<1x128xf32>
    %29 = vector.broadcast %28 : vector<1x128xf32> to vector<8x128xf32>
    %30 = arith.addf %27, %29 : vector<8x128xf32>
    %31 = arith.addf %1, %30 : vector<8x128xf32>
    %c0_23 = arith.constant 0 : index
    %c0_24 = arith.constant 0 : index
    %32 = vector.load %arg10[%c0_23, %c0_24] : memref<8x256xf32, #tpu.memory_space<vmem>>, vector<8x128xf32>
    tpu.vector_store %arg10[%c0_23, %c0_24], %16 {strides = array<i32>} : memref<8x256xf32, #tpu.memory_space<vmem>>, vector<8x128xf32>,
    %c0_25 = arith.constant 0 : index
    %c128_26 = arith.constant 128 : index
    %33 = vector.load %arg10[%c0_25, %c128_26] : memref<8x256xf32, #tpu.memory_space<vmem>>, vector<8x128xf32>
    tpu.vector_store %arg10[%c0_25, %c128_26], %31 {strides = array<i32>} : memref<8x256xf32, #tpu.memory_space<vmem>>, vector<8x128xf32>,
    return
  }
  func.func @transform_0(%arg0: i32) -> (i32, i32) {
    %c0_i32 = arith.constant 0 : i32
    %c0_i32_0 = arith.constant 0 : i32
    return %arg0, %c0_i32 : i32, i32
  }
  func.func @transform_1(%arg0: i32) -> (i32, i32) {
    %c0_i32 = arith.constant 0 : i32
    %c0_i32_0 = arith.constant 0 : i32
    %c0_i32_1 = arith.constant 0 : i32
    return %c0_i32, %c0_i32_0 : i32, i32
  }
  func.func @transform_2(%arg0: i32) -> (i32, i32) {
    %c0_i32 = arith.constant 0 : i32
    %c0_i32_0 = arith.constant 0 : i32
    %c0_i32_1 = arith.constant 0 : i32
    return %c0_i32, %c0_i32_0 : i32, i32
  }
  func.func @transform_3(%arg0: i32) -> (i32, i32) {
    %c0_i32 = arith.constant 0 : i32
    %c0_i32_0 = arith.constant 0 : i32
    %c0_i32_1 = arith.constant 0 : i32
    return %c0_i32, %c0_i32_0 : i32, i32
  }
  func.func @transform_4(%arg0: i32) -> (i32, i32) {
    %c0_i32 = arith.constant 0 : i32
    %c0_i32_0 = arith.constant 0 : i32
    %c0_i32_1 = arith.constant 0 : i32
    return %c0_i32, %c0_i32_0 : i32, i32
  }
  func.func @transform_5(%arg0: i32) -> (i32, i32) {
    %c0_i32 = arith.constant 0 : i32
    %c0_i32_0 = arith.constant 0 : i32
    %c0_i32_1 = arith.constant 0 : i32
    return %c0_i32, %c0_i32_0 : i32, i32
  }
  func.func @transform_6(%arg0: i32) -> (i32, i32) {
    %c0_i32 = arith.constant 0 : i32
    %c0_i32_0 = arith.constant 0 : i32
    %c0_i32_1 = arith.constant 0 : i32
    return %c0_i32, %c0_i32_0 : i32, i32
  }
  func.func @transform_7(%arg0: i32) -> (i32, i32) {
    %c0_i32 = arith.constant 0 : i32
    %c0_i32_0 = arith.constant 0 : i32
    %c0_i32_1 = arith.constant 0 : i32
    return %c0_i32, %c0_i32_0 : i32, i32
  }
  func.func @transform_8(%arg0: i32) -> (i32, i32) {
    %c0_i32 = arith.constant 0 : i32
    %c0_i32_0 = arith.constant 0 : i32
    %c0_i32_1 = arith.constant 0 : i32
    return %c0_i32, %c0_i32_0 : i32, i32
  }
  func.func @transform_9(%arg0: i32) -> (i32, i32) {
    %c0_i32 = arith.constant 0 : i32
    %c0_i32_0 = arith.constant 0 : i32
    return %arg0, %c0_i32 : i32, i32
  }
}

</mosaic_0001>

<bundles_post_ra>
// kernel: reversible_block_forward.1
= control target key start
LH: loop header
LB: loop body
LE: loop exit
PB: predicated region body
PF: predicated region fallthrough
CT: control target
= control target key end

     0   :  { %s967_s30 = smov 0   ;;  %s1108_s0 = inlined_call_operand.vmem [shape: f32[16,256], index: 0, kind: input, shape index: {}]   ;;  %s1109_s1 = inlined_call_operand.vmem [shape: bf16[128,128], index: 1, kind: input, shape index: {}]   ;;  %s1110_s2 = inlined_call_operand.vmem [shape: f32[1,128], index: 2, kind: input, shape index: {}]   ;;  %s1111_s3 = inlined_call_operand.vmem [shape: bf16[128,128], index: 3, kind: input, shape index: {}]   ;;  %s1112_s4 = inlined_call_operand.vmem [shape: f32[1,128], index: 4, kind: input, shape index: {}]   ;;  %s1113_s5 = inlined_call_operand.vmem [shape: bf16[128,128], index: 5, kind: input, shape index: {}]   ;;  %s1114_s6 = inlined_call_operand.vmem [shape: f32[1,128], index: 6, kind: input, shape index: {}]   ;;  %s1115_s7 = inlined_call_operand.vmem [shape: bf16[128,128], index: 7, kind: input, shape index: {}]   ;;  %s1116_s8 = inlined_call_operand.vmem [shape: f32[1,128], index: 8, kind: input, shape index: {}]   ;;  %s1117_s9 = inlined_call_operand.vmem [shape: f32[16,256], index: 9, kind: output, shape index: {}]  }
   0x1 LB: > { %s724_s10 = sadd.s32 4294967295, %s915_s30   ;;  %p728_p0 = scmp.ge.s32.totalorder %s915_s30, 1  ;;  %s915_s30 = sphi %s967_s30, %s19_s30  }
   0x2   : > { %p287_p1 = scmp.lt.s32.totalorder %s915_s30, 3 }
   0x4   : > { %p288_p2 = pnand %p728_p0, %p287_p1 }
   0x5   : > { %p323_p3 = scmp.lt.s32.totalorder (!%p288_p2), %s724_s10, 1 }
   0x6   : > { %291 = sbr.rel (%p288_p2) target bundleno = 585 (0x249), region = 56 }
   0xb   : > { %v872_v0 = vld [vmem:[%s1109_s1 + $0x38] sm:$0xff]  ;;  %v871_v1 = vld [vmem:[%s1109_s1 + $0x30] sm:$0xff]  ;;  %v870_v4 = vld [vmem:[%s1109_s1 + $0x28] sm:$0xff]  ;;  %s1119_s10 = smov (!%p323_p3, %s724_s10), 1 }
   0xc   : > { %404 = vmatpush.bf16.msra.mxu0 %v872_v0  ;;  %v880_v2 = vld [vmem:[%s1111_s3 + $0x38] sm:$0xff]  ;;  %v879_v3 = vld [vmem:[%s1111_s3 + $0x30] sm:$0xff]  ;;  %v878_v5 = vld [vmem:[%s1111_s3 + $0x28] sm:$0xff]  ;;  %s863_s14 = sshll.u32 %s1119_s10, 4 }
   0xd   : > { %487 = vmatpush.bf16.msra.mxu1 %v880_v2  ;;  %v869_v6 = vld [vmem:[%s1109_s1 + $0x20] sm:$0xff]  ;;  %v868_v8 = vld [vmem:[%s1109_s1 + $0x18] sm:$0xff]  ;;  %v867_v10 = vld [vmem:[%s1109_s1 + $0x10] sm:$0xff]  ;;  %s1022_s21 = scalar_lea.vmem %s1108_s0, %s863_s14  ;;  %s332_s28 = scalar_lea.vmem %s1117_s9, %s863_s14 }
   0xe   : > { %v877_v7 = vld [vmem:[%s1111_s3 + $0x20] sm:$0xff]  ;;  %v876_v9 = vld [vmem:[%s1111_s3 + $0x18] sm:$0xff]  ;;  %v875_v11 = vld [vmem:[%s1111_s3 + $0x10] sm:$0xff] }
   0xf   : > { %v866_v12 = vld [vmem:[%s1109_s1 + $0x8] sm:$0xff]  ;;  %v865_v13 = vld [vmem:[%s1109_s1] sm:$0xff]  ;;  %v888_v18 = vld [vmem:[%s1113_s5 + $0x38] sm:$0xff] }
  0x10   : > { %405 = vmatpush.bf16.msra.mxu0 %v871_v1  ;;  %v1028_v14 = vld [vmem:[%s1022_s21 + $0x8] sm:$0xff]  ;;  %v873_v17 = vld [vmem:[%s1111_s3] sm:$0xff]  ;;  %570 = vmatpush.bf16.msra.mxu2 %v888_v18  ;;  %v887_v19 = vld [vmem:[%s1113_s5 + $0x30] sm:$0xff] }
  0x11   : > { %488 = vmatpush.bf16.msra.mxu1 %v879_v3  ;;  %v335_v15 = vpack.c.bf16 %v1028_v14, %v1028_v14  ;;  %v874_v16 = vld [vmem:[%s1111_s3 + $0x8] sm:$0xff]  ;;  %v885_v21 = vld [vmem:[%s1113_s5 + $0x20] sm:$0xff]  ;;  %v884_v22 = vld [vmem:[%s1113_s5 + $0x18] sm:$0xff] }
  0x12   : > { %v886_v20 = vld [vmem:[%s1113_s5 + $0x28] sm:$0xff]  ;;  %v883_v23 = vld [vmem:[%s1113_s5 + $0x10] sm:$0xff]  ;;  %v905_v24 = vld [vmem:[%s1110_s2] ss:$0 sm:$0xff] }
  0x13   : > { %v882_v30 = vld [vmem:[%s1113_s5 + $0x8] sm:$0xff]  ;;  %v881_v31 = vld [vmem:[%s1113_s5] sm:$0xff]  ;;  %v896_v32 = vld [vmem:[%s1115_s7 + $0x38] sm:$0xff] }
  0x14   : > { %406 = vmatpush.bf16.msra.mxu0 %v870_v4  ;;  %571 = vmatpush.bf16.msra.mxu2 %v887_v19  ;;  %v895_v33 = vld [vmem:[%s1115_s7 + $0x30] sm:$0xff]  ;;  %v894_v34 = vld [vmem:[%s1115_s7 + $0x28] sm:$0xff]  ;;  %v893_v35 = vld [vmem:[%s1115_s7 + $0x20] sm:$0xff] }
  0x15   : > { %489 = vmatpush.bf16.msra.mxu1 %v878_v5  ;;  %653 = vmatpush.bf16.msra.mxu3 %v896_v32  ;;  %v892_v36 = vld [vmem:[%s1115_s7 + $0x18] sm:$0xff]  ;;  %v891_v37 = vld [vmem:[%s1115_s7 + $0x10] sm:$0xff]  ;;  %v906_v38 = vld [vmem:[%s1112_s4] ss:$0 sm:$0xff] }
  0x16   : > { %v333_v39 = vld [vmem:[%s1022_s21] sm:$0xff]  ;;  %v890_v45 = vld [vmem:[%s1115_s7 + $0x8] sm:$0xff] }
  0x17   : > { %v889_v46 = vld [vmem:[%s1115_s7] sm:$0xff] }
  0x18   : > { %407 = vmatpush.bf16.msra.mxu0 %v869_v6  ;;  %572 = vmatpush.bf16.msra.mxu2 %v886_v20  ;;  %v907_v47 = vld [vmem:[%s1114_s6] ss:$0 sm:$0xff] }
  0x19   : > { %490 = vmatpush.bf16.msra.mxu1 %v877_v7  ;;  %654 = vmatpush.bf16.msra.mxu3 %v895_v33  ;;  %v908_v53 = vld [vmem:[%s1116_s8] ss:$0 sm:$0xff] }
  0x1c   : > { %408 = vmatpush.bf16.msra.mxu0 %v868_v8  ;;  %573 = vmatpush.bf16.msra.mxu2 %v885_v21 }
  0x1d   : > { %491 = vmatpush.bf16.msra.mxu1 %v876_v9  ;;  %655 = vmatpush.bf16.msra.mxu3 %v894_v34 }
  0x20   : > { %409 = vmatpush.bf16.msra.mxu0 %v867_v10  ;;  %574 = vmatpush.bf16.msra.mxu2 %v884_v22 }
  0x21   : > { %492 = vmatpush.bf16.msra.mxu1 %v875_v11  ;;  %656 = vmatpush.bf16.msra.mxu3 %v893_v35 }
  0x24   : > { %410 = vmatpush.bf16.msra.mxu0 %v866_v12  ;;  %575 = vmatpush.bf16.msra.mxu2 %v883_v23 }
  0x25   : > { %493 = vmatpush.bf16.msra.mxu1 %v874_v16  ;;  %657 = vmatpush.bf16.msra.mxu3 %v892_v36 }
  0x28   : > { %411 = vmatpush.bf16.msra.mxu0 %v865_v13  ;;  %576 = vmatpush.bf16.msra.mxu2 %v882_v30 }
  0x29   : > { %494 = vmatpush.bf16.msra.mxu1 %v873_v17  ;;  %658 = vmatpush.bf16.msra.mxu3 %v891_v37 }
  0x2b   : > { %412 = vmatmul.bf16.vlgmr.msra.gmra.mxu0 %v335_v15 }
  0x2c   : > { %577 = vmatpush.bf16.msra.mxu2 %v881_v31 }
  0x2d   : > { %659 = vmatpush.bf16.msra.mxu3 %v890_v45 }
  0x31   : > { %660 = vmatpush.bf16.msra.mxu3 %v889_v46 }
  0xa8   : > { %v413_v25 = vpop.f32.mrf.mxu0 }
  0xa9   : > { %v414_v26 = vadd.f32 %v905_v24, %v413_v25 }
  0xab   : > { %v417_v27 = vmax.f32 %v414_v26, 0.0 }
  0xad   : > { %v418_v28 = vpack.c.bf16 %v417_v27, %v417_v27 }
  0xaf   : > { %495 = vmatmul.bf16.vlgmr.msra.gmra.mxu1 %v418_v28 }
  0xb0   : > { %v415_v29 = vpop.f32.mrf.mxu0 }
 0x12c   : > { %v496_v40 = vpop.f32.mrf.mxu1 }
 0x12d   : > { %v497_v41 = vadd.f32 %v906_v38, %v496_v40 }
 0x12f   : > { %v500_v42 = vadd.f32 %v497_v41, %v333_v39 }
 0x131   : > { %667 = vst [vmem:[%s332_s28] sm:$0xff] %v500_v42  ;;  %v501_v43 = vpack.c.bf16 %v500_v42, %v500_v42 }
 0x133   : > { %578 = vmatmul.bf16.vlgmr.msra.gmra.mxu2 %v501_v43 }
 0x134   : > { %v498_v44 = vpop.f32.mrf.mxu1 }
 0x1b6   : > { %v579_v48 = vpop.f32.mrf.mxu2 }
 0x1b7   : > { %v580_v49 = vadd.f32 %v907_v47, %v579_v48 }
 0x1b9   : > { %v583_v50 = vmax.f32 %v580_v49, 0.0 }
 0x1bb   : > { %v584_v51 = vpack.c.bf16 %v583_v50, %v583_v50 }
 0x1bd   : > { %661 = vmatmul.bf16.vlgmr.msra.gmra.mxu3 %v584_v51 }
 0x1be   : > { %v581_v52 = vpop.f32.mrf.mxu2 }
 0x240   : > { %v662_v54 = vpop.f32.mrf.mxu3 }
 0x241   : > { %v663_v55 = vadd.f32 %v908_v53, %v662_v54 }
 0x243   : > { %v666_v56 = vadd.f32 %v663_v55, %v1028_v14 }
 0x245   : > { %668 = vst [vmem:[%s332_s28 + $0x8] sm:$0xff] %v666_v56 }
 0x248   : > { %v664_v57 = vpop.f32.mrf.mxu3 }
 0x249 PF: > { %s19_s30 = sadd.s32 1, %s915_s30  }
 0x24a   : > { %p16_p4 = scmp.ge.s32.totalorder %s19_s30, 4  }
 0x24c   :  { %18 = sbr.rel (!%p16_p4) target bundleno = 1 (0x1), region = 86 }

</bundles_post_ra>
